<compile_context>
chip_gen: v7x
topology: tpu7x:2x2x1
jax: 0.10.0
libtpu: 0.0.40
codegen_flags: <defaults>
</compile_context>

<pallas_src>
import math

import jax
import jax.numpy as jnp
from jax.experimental import pallas as pl
from jax.experimental.pallas import tpu as pltpu


# ----------------------------------------------------------------------------
# ShortSideScale: sizing and interpolation-matrix construction (host-side glue)
# ----------------------------------------------------------------------------

def _round_up(v: int, m: int) -> int:
    return ((v + m - 1) // m) * m


def _short_side_dims(h: int, w: int, size: int):
    """Replicates pytorchvideo.transforms.functional.short_side_scale sizing."""
    if w < h:
        return int(math.floor((float(h) / w) * size)), size
    return size, int(math.floor((float(w) / h) * size))


def _bilinear_matrix(in_size: int, out_size: int) -> jnp.ndarray:
    """(out_size, in_size) bilinear interpolation matrix, align_corners=False."""
    scale = in_size / out_size
    dst = jnp.arange(out_size, dtype=jnp.float32)
    src = jnp.maximum((dst + 0.5) * scale - 0.5, 0.0)
    i0 = jnp.minimum(jnp.floor(src).astype(jnp.int32), in_size - 1)
    i1 = jnp.minimum(i0 + 1, in_size - 1)
    frac = src - i0.astype(jnp.float32)
    rows = jnp.arange(out_size)
    m = jnp.zeros((out_size, in_size), jnp.float32)
    m = m.at[rows, i0].add(1.0 - frac)
    m = m.at[rows, i1].add(frac)
    return m


def _vmem_capacity_bytes() -> int:
    try:
        return int(pltpu.get_tpu_info().vmem_capacity_bytes)
    except Exception:
        return 64 * 1024 * 1024   # conservative (v7x per-TC)


# ----------------------------------------------------------------------------
# Pallas kernel: batched separable bilinear resize
#   rows_first : per-frame (new_h_pad, H) @ (H, W) into a VMEM scratch laid out
#                (BF*new_h_pad, W), then ONE flattened (BF*new_h_pad, W) @ (W, Wp).
#   cols_first : ONE flattened (BF*H, W) @ (W, Wp), then per-frame
#                (new_h_pad, H) @ (H, Wp) written straight to the output slice.
# Weights are never broadcast; they stay single (new_h_pad, H) / (W, Wp) tiles.
# ----------------------------------------------------------------------------

def _make_resize_kernel(bf, h, w, new_h_pad, w_pad, rows_first, compute_dtype):
    def rows_first_kernel(x_ref, wh_ref, ww_ref, o_ref, tmp_ref):
        wh = wh_ref[...]                                        # (new_h_pad, H)
        for i in range(bf):
            xi = x_ref[i].astype(compute_dtype)                 # (H, W)
            tmp_ref[pl.ds(i * new_h_pad, new_h_pad), :] = jnp.dot(
                wh, xi, preferred_element_type=jnp.float32).astype(compute_dtype)
        res = jnp.dot(tmp_ref[...], ww_ref[...],
                      preferred_element_type=jnp.float32)       # (BF*new_h_pad, Wp)
        o_ref[...] = res.reshape(bf, new_h_pad, w_pad).astype(o_ref.dtype)

    def cols_first_kernel(x_ref, wh_ref, ww_ref, o_ref, tmp_ref):
        x2 = x_ref[...].reshape(bf * h, w).astype(compute_dtype)   # free merge (h%8==0)
        tmp_ref[...] = jnp.dot(x2, ww_ref[...],
                               preferred_element_type=jnp.float32
                               ).astype(compute_dtype)           # (BF*H, Wp)
        wh = wh_ref[...]
        for i in range(bf):
            o_ref[i] = jnp.dot(wh, tmp_ref[pl.ds(i * h, h), :],
                               preferred_element_type=jnp.float32).astype(o_ref.dtype)

    return rows_first_kernel if rows_first else cols_first_kernel


def _short_side_scale_impl(x: jnp.ndarray, size: int, use_bf16: bool = True):
    """x: (C, T, H, W) float32 -> (C, T, new_h, new_w) float32."""
    assert x.ndim == 4 and x.dtype == jnp.float32
    c, t, h, w = x.shape
    new_h, new_w = _short_side_dims(h, w, size)

    compute_dtype = jnp.bfloat16 if use_bf16 else jnp.float32
    cd_size = jnp.dtype(compute_dtype).itemsize
    sub = 16 if use_bf16 else 8                    # sublane pack granularity
    new_h_pad = _round_up(new_h, sub)
    w_pad = _round_up(new_w, 128)                  # lane-dense output stores

    b = c * t
    x_flat = x.reshape(b, h, w)

    # Interpolation matrices, zero-padded so all kernel offsets are aligned.
    wh = jnp.zeros((new_h_pad, h), jnp.float32)
    wh = wh.at[:new_h, :].set(_bilinear_matrix(h, new_h)).astype(compute_dtype)
    ww = jnp.zeros((w, w_pad), jnp.float32)
    ww = ww.at[:, :new_w].set(_bilinear_matrix(w, new_w).T).astype(compute_dtype)

    # Generation-aware VMEM budgeting.
    vmem_cap = _vmem_capacity_bytes()
    budget = min(48 << 20, max(8 << 20, int(0.35 * vmem_cap)))

    def vmem_est(n):
        in_blk = n * h * w * 4
        out_blk = n * new_h_pad * w_pad * 4
        scratch = n * max(new_h_pad * w, h * w_pad) * cd_size
        weights = (new_h_pad * h + w * w_pad) * cd_size
        live = n * max(new_h_pad, h) * w_pad * 4        # f32 matmul result in flight
        return 2 * (in_blk + out_blk + weights) + scratch + live

    bf = min(32, b if b <= 3 else max(1, b // 2))   # keep >=2 grid steps when possible
    while bf > 1 and vmem_est(bf) > budget:
        bf -= 1
    # TODO(synk): if even bf=1 exceeds the budget (e.g. 4K frames on v7x's 64 MiB
    # VMEM), add a second grid axis tiling new_h with an overlap-fetched input
    # row window; not needed at these shapes.

    # Matmul-order choice from MXU-padded FLOPs (lane/tile padded dims).
    p128 = lambda v: _round_up(v, 128)
    rows_cost = bf * p128(new_h_pad) * p128(h) * p128(w) + p128(bf * new_h_pad) * p128(w) * w_pad
    cols_cost = p128(bf * h) * p128(w) * w_pad + bf * p128(new_h_pad) * p128(h) * w_pad
    rows_first = True if (h % 8 != 0) else (rows_cost <= cols_cost)
    scratch_shape = (bf * new_h_pad, w) if rows_first else (bf * h, w_pad)

    grid = (pl.cdiv(b, bf),)       # non-divisible grid: Pallas masks the partial block
    macs = (b * (new_h * h * w + new_h * w * w_pad) if rows_first
            else b * (h * w * w_pad + new_h * h * w_pad))
    bytes_accessed = int(4 * (b * h * w + b * new_h_pad * w_pad)
                         + cd_size * (new_h_pad * h + w * w_pad))
    vmem_limit = int(min(int(0.70 * vmem_cap),
                         max(32 << 20, int(1.5 * vmem_est(bf)))))

    out = pl.pallas_call(
        _make_resize_kernel(bf, h, w, new_h_pad, w_pad, rows_first, compute_dtype),
        out_shape=jax.ShapeDtypeStruct((b, new_h_pad, w_pad), jnp.float32),
        grid_spec=pltpu.PrefetchScalarGridSpec(
            num_scalar_prefetch=0,
            grid=grid,
            in_specs=[
                pl.BlockSpec((bf, h, w), lambda i: (i, 0, 0)),
                # Constant index maps: Pallas only re-issues the weight DMA when
                # the block index changes, so these are fetched once.
                pl.BlockSpec((new_h_pad, h), lambda i: (0, 0)),
                pl.BlockSpec((w, w_pad), lambda i: (0, 0)),
            ],
            out_specs=pl.BlockSpec((bf, new_h_pad, w_pad), lambda i: (i, 0, 0)),
            scratch_shapes=[pltpu.VMEM(scratch_shape, compute_dtype)],
        ),
        compiler_params=pltpu.CompilerParams(
            dimension_semantics=("parallel",),
            vmem_limit_bytes=vmem_limit,
        ),
        cost_estimate=pl.CostEstimate(
            flops=int(2 * macs), transcendentals=0, bytes_accessed=bytes_accessed),
    )(x_flat, wh, ww)

    # Slice off sublane/lane padding; restore (C, T, new_h, new_w).  (Fused by jit.)
    return out[:, :new_h, :new_w].reshape(c, t, new_h, new_w)


short_side_scale = jax.jit(_short_side_scale_impl, static_argnames=("size", "use_bf16"))


class ShortSideScale:
    """Pallas-backed transform used as a member of OpSampler's transform list."""

    def __init__(self, size: int, use_bf16: bool = True):
        self._size = size
        self._use_bf16 = use_bf16

    def __call__(self, x: jnp.ndarray) -> jnp.ndarray:
        return short_side_scale(x, size=self._size, use_bf16=self._use_bf16)


# ----------------------------------------------------------------------------
# OpSampler: weighted sampling of transforms, applied sequentially
# ----------------------------------------------------------------------------

class OpSampler:
    """JAX equivalent of pytorchvideo OpSampler."""

    def __init__(self, transforms_list, transforms_prob=None, num_sample_op=1,
                 replacement=False, *, key=None):
        assert len(transforms_list) > 0, "Argument transforms_list cannot be empty."
        assert num_sample_op > 0, "Need to sample at least one transform."
        assert num_sample_op <= len(transforms_list), (
            "Argument num_sample_op cannot be greater than number of available transforms.")
        if transforms_prob is not None:
            assert len(transforms_prob) == len(transforms_list), (
                "Argument transforms_prob needs to have the same length as transforms_list.")
            assert min(transforms_prob) > 0, (
                "Argument transforms_prob needs to be greater than 0.")
        self.transforms_list = list(transforms_list)
        probs = transforms_prob if transforms_prob is not None else [1.0] * len(transforms_list)
        self.transforms_prob = jnp.asarray(probs, dtype=jnp.float32)
        self.num_sample_op = num_sample_op
        self.replacement = replacement
        self._key = key if key is not None else jax.random.PRNGKey(0)

    def __call__(self, x: jnp.ndarray, key=None) -> jnp.ndarray:
        if key is None:
            self._key, key = jax.random.split(self._key)
        n = len(self.transforms_list)
        p = self.transforms_prob / jnp.sum(self.transforms_prob)
        idx = jax.random.choice(key, n, shape=(self.num_sample_op,),
                                replace=self.replacement, p=p)
        # TODO(synk): index-driven transform dispatch is host-side Python control
        # flow (same as torch.multinomial + list indexing in eager PyTorch); it has
        # no Pallas equivalent — only the transforms themselves run as TPU kernels.
        for i in jax.device_get(idx).tolist():
            x = self.transforms_list[int(i)](x)
        return x


# ----------------------------------------------------------------------------
# Plain-JAX reference for the resize kernel (correctness check only)
# ----------------------------------------------------------------------------

def _short_side_scale_ref(x: jnp.ndarray, size: int) -> jnp.ndarray:
    c, t, h, w = x.shape
    new_h, new_w = _short_side_dims(h, w, size)
    wh = _bilinear_matrix(h, new_h)
    ww = _bilinear_matrix(w, new_w)
    return jnp.einsum('gh,cthw,nw->ctgn', wh, x, ww)


if __name__ == "__main__":
    key = jax.random.PRNGKey(0)
    # (C, T, H, W); non-square spatial dims exercise the short-side logic.
    x = jax.random.normal(key, (3, 4, 16, 24), dtype=jnp.float32)

    # Sanity-check the Pallas resize kernel against the plain-JAX reference,
    # both the bf16-MXU default path and the exact f32 path.
    y_ref = _short_side_scale_ref(x, 8)
    y_bf16 = jax.block_until_ready(short_side_scale(x, size=8))
    y_f32 = jax.block_until_ready(short_side_scale(x, size=8, use_bf16=False))
    assert y_bf16.shape == y_f32.shape == y_ref.shape == (3, 4, 8, 12), y_bf16.shape
    assert jnp.allclose(y_f32, y_ref, atol=1e-4, rtol=1e-4)
    assert jnp.allclose(y_bf16, y_ref, atol=3e-2, rtol=3e-2)

    # OpSampler over three Pallas-backed transforms, sampling 2 without replacement.
    transforms = [ShortSideScale(8), ShortSideScale(12), ShortSideScale(10)]
    sampler = OpSampler(transforms, transforms_prob=[0.2, 0.5, 0.3],
                        num_sample_op=2, replacement=False,
                        key=jax.random.PRNGKey(0))
    out = jax.block_until_ready(sampler(x))

    assert out.ndim == 4 and out.shape[:2] == (3, 4), out.shape
    assert out.dtype == jnp.float32
    print("KERNEL_OK")
</pallas_src>

<mosaic_0001>
module attributes {stable_mosaic.version = 11 : i64} {
  func.func @rows_first_kernel(%arg0: i32, %arg1: memref<6x16x24xf32, #tpu.memory_space<vmem>>, %arg2: memref<16x16xbf16, #tpu.memory_space<vmem>>, %arg3: memref<24x128xbf16, #tpu.memory_space<vmem>>, %arg4: memref<6x16x128xf32, #tpu.memory_space<vmem>>, %arg5: memref<96x24xbf16, #tpu.memory_space<vmem>>) attributes {dimension_semantics = [#tpu.dimension_semantics<parallel>], iteration_bounds = array<i64: 2>, scalar_prefetch = 0 : i64, scratch_operands = 1 : i64, tpu.core_type = #tpu.core_type<tc>, window_params = [{transform_indices = @transform_0, window_bounds = array<i64: 6, 16, 24>}, {pipeline_mode = #tpu.pipeline_mode<synchronous>, transform_indices = @transform_1, window_bounds = array<i64: 16, 16>}, {pipeline_mode = #tpu.pipeline_mode<synchronous>, transform_indices = @transform_2, window_bounds = array<i64: 24, 128>}, {transform_indices = @transform_3, window_bounds = array<i64: 6, 16, 128>}]} {
    %c0 = arith.constant 0 : index
    %c0_0 = arith.constant 0 : index
    %0 = vector.load %arg2[%c0, %c0_0] : memref<16x16xbf16, #tpu.memory_space<vmem>>, vector<16x16xbf16>
    %c0_1 = arith.constant 0 : index
    %c0_2 = arith.constant 0 : index
    %c0_3 = arith.constant 0 : index
    %1 = vector.load %arg1[%c0_1, %c0_2, %c0_3] : memref<6x16x24xf32, #tpu.memory_space<vmem>>, vector<1x16x24xf32>
    %2 = vector.shape_cast %1 : vector<1x16x24xf32> to vector<16x24xf32>
    %3 = arith.truncf %2 : vector<16x24xf32> to vector<16x24xbf16>
    %cst = arith.constant dense<0.000000e+00> : vector<16x24xf32>
    %4 = tpu.matmul %0, %3, %cst {dimension_numbers = #tpu.dot_dimension_numbers<[1], [0], [0], [1], [0, 0, 1, 1], [], []>} : vector<16x16xbf16>, vector<16x24xbf16>, vector<16x24xf32> -> vector<16x24xf32>
    %5 = arith.truncf %4 : vector<16x24xf32> to vector<16x24xbf16>
    %c0_4 = arith.constant 0 : index
    %c0_5 = arith.constant 0 : index
    %6 = vector.load %arg5[%c0_4, %c0_5] : memref<96x24xbf16, #tpu.memory_space<vmem>>, vector<16x24xbf16>
    tpu.vector_store %arg5[%c0_4, %c0_5], %5 {strides = array<i32>} : memref<96x24xbf16, #tpu.memory_space<vmem>>, vector<16x24xbf16>,
    %c1 = arith.constant 1 : index
    %c0_6 = arith.constant 0 : index
    %c0_7 = arith.constant 0 : index
    %7 = vector.load %arg1[%c1, %c0_6, %c0_7] : memref<6x16x24xf32, #tpu.memory_space<vmem>>, vector<1x16x24xf32>
    %8 = vector.shape_cast %7 : vector<1x16x24xf32> to vector<16x24xf32>
    %9 = arith.truncf %8 : vector<16x24xf32> to vector<16x24xbf16>
    %cst_8 = arith.constant dense<0.000000e+00> : vector<16x24xf32>
    %10 = tpu.matmul %0, %9, %cst_8 {dimension_numbers = #tpu.dot_dimension_numbers<[1], [0], [0], [1], [0, 0, 1, 1], [], []>} : vector<16x16xbf16>, vector<16x24xbf16>, vector<16x24xf32> -> vector<16x24xf32>
    %11 = arith.truncf %10 : vector<16x24xf32> to vector<16x24xbf16>
    %c16 = arith.constant 16 : index
    %c0_9 = arith.constant 0 : index
    %12 = vector.load %arg5[%c16, %c0_9] : memref<96x24xbf16, #tpu.memory_space<vmem>>, vector<16x24xbf16>
    tpu.vector_store %arg5[%c16, %c0_9], %11 {strides = array<i32>} : memref<96x24xbf16, #tpu.memory_space<vmem>>, vector<16x24xbf16>,
    %c2 = arith.constant 2 : index
    %c0_10 = arith.constant 0 : index
    %c0_11 = arith.constant 0 : index
    %13 = vector.load %arg1[%c2, %c0_10, %c0_11] : memref<6x16x24xf32, #tpu.memory_space<vmem>>, vector<1x16x24xf32>
    %14 = vector.shape_cast %13 : vector<1x16x24xf32> to vector<16x24xf32>
    %15 = arith.truncf %14 : vector<16x24xf32> to vector<16x24xbf16>
    %cst_12 = arith.constant dense<0.000000e+00> : vector<16x24xf32>
    %16 = tpu.matmul %0, %15, %cst_12 {dimension_numbers = #tpu.dot_dimension_numbers<[1], [0], [0], [1], [0, 0, 1, 1], [], []>} : vector<16x16xbf16>, vector<16x24xbf16>, vector<16x24xf32> -> vector<16x24xf32>
    %17 = arith.truncf %16 : vector<16x24xf32> to vector<16x24xbf16>
    %c32 = arith.constant 32 : index
    %c0_13 = arith.constant 0 : index
    %18 = vector.load %arg5[%c32, %c0_13] : memref<96x24xbf16, #tpu.memory_space<vmem>>, vector<16x24xbf16>
    tpu.vector_store %arg5[%c32, %c0_13], %17 {strides = array<i32>} : memref<96x24xbf16, #tpu.memory_space<vmem>>, vector<16x24xbf16>,
    %c3 = arith.constant 3 : index
    %c0_14 = arith.constant 0 : index
    %c0_15 = arith.constant 0 : index
    %19 = vector.load %arg1[%c3, %c0_14, %c0_15] : memref<6x16x24xf32, #tpu.memory_space<vmem>>, vector<1x16x24xf32>
    %20 = vector.shape_cast %19 : vector<1x16x24xf32> to vector<16x24xf32>
    %21 = arith.truncf %20 : vector<16x24xf32> to vector<16x24xbf16>
    %cst_16 = arith.constant dense<0.000000e+00> : vector<16x24xf32>
    %22 = tpu.matmul %0, %21, %cst_16 {dimension_numbers = #tpu.dot_dimension_numbers<[1], [0], [0], [1], [0, 0, 1, 1], [], []>} : vector<16x16xbf16>, vector<16x24xbf16>, vector<16x24xf32> -> vector<16x24xf32>
    %23 = arith.truncf %22 : vector<16x24xf32> to vector<16x24xbf16>
    %c48 = arith.constant 48 : index
    %c0_17 = arith.constant 0 : index
    %24 = vector.load %arg5[%c48, %c0_17] : memref<96x24xbf16, #tpu.memory_space<vmem>>, vector<16x24xbf16>
    tpu.vector_store %arg5[%c48, %c0_17], %23 {strides = array<i32>} : memref<96x24xbf16, #tpu.memory_space<vmem>>, vector<16x24xbf16>,
    %c4 = arith.constant 4 : index
    %c0_18 = arith.constant 0 : index
    %c0_19 = arith.constant 0 : index
    %25 = vector.load %arg1[%c4, %c0_18, %c0_19] : memref<6x16x24xf32, #tpu.memory_space<vmem>>, vector<1x16x24xf32>
    %26 = vector.shape_cast %25 : vector<1x16x24xf32> to vector<16x24xf32>
    %27 = arith.truncf %26 : vector<16x24xf32> to vector<16x24xbf16>
    %cst_20 = arith.constant dense<0.000000e+00> : vector<16x24xf32>
    %28 = tpu.matmul %0, %27, %cst_20 {dimension_numbers = #tpu.dot_dimension_numbers<[1], [0], [0], [1], [0, 0, 1, 1], [], []>} : vector<16x16xbf16>, vector<16x24xbf16>, vector<16x24xf32> -> vector<16x24xf32>
    %29 = arith.truncf %28 : vector<16x24xf32> to vector<16x24xbf16>
    %c64 = arith.constant 64 : index
    %c0_21 = arith.constant 0 : index
    %30 = vector.load %arg5[%c64, %c0_21] : memref<96x24xbf16, #tpu.memory_space<vmem>>, vector<16x24xbf16>
    tpu.vector_store %arg5[%c64, %c0_21], %29 {strides = array<i32>} : memref<96x24xbf16, #tpu.memory_space<vmem>>, vector<16x24xbf16>,
    %c5 = arith.constant 5 : index
    %c0_22 = arith.constant 0 : index
    %c0_23 = arith.constant 0 : index
    %31 = vector.load %arg1[%c5, %c0_22, %c0_23] : memref<6x16x24xf32, #tpu.memory_space<vmem>>, vector<1x16x24xf32>
    %32 = vector.shape_cast %31 : vector<1x16x24xf32> to vector<16x24xf32>
    %33 = arith.truncf %32 : vector<16x24xf32> to vector<16x24xbf16>
    %cst_24 = arith.constant dense<0.000000e+00> : vector<16x24xf32>
    %34 = tpu.matmul %0, %33, %cst_24 {dimension_numbers = #tpu.dot_dimension_numbers<[1], [0], [0], [1], [0, 0, 1, 1], [], []>} : vector<16x16xbf16>, vector<16x24xbf16>, vector<16x24xf32> -> vector<16x24xf32>
    %35 = arith.truncf %34 : vector<16x24xf32> to vector<16x24xbf16>
    %c80 = arith.constant 80 : index
    %c0_25 = arith.constant 0 : index
    %36 = vector.load %arg5[%c80, %c0_25] : memref<96x24xbf16, #tpu.memory_space<vmem>>, vector<16x24xbf16>
    tpu.vector_store %arg5[%c80, %c0_25], %35 {strides = array<i32>} : memref<96x24xbf16, #tpu.memory_space<vmem>>, vector<16x24xbf16>,
    %c0_26 = arith.constant 0 : index
    %c0_27 = arith.constant 0 : index
    %37 = vector.load %arg5[%c0_26, %c0_27] : memref<96x24xbf16, #tpu.memory_space<vmem>>, vector<96x24xbf16>
    %c0_28 = arith.constant 0 : index
    %c0_29 = arith.constant 0 : index
    %38 = vector.load %arg3[%c0_28, %c0_29] : memref<24x128xbf16, #tpu.memory_space<vmem>>, vector<24x128xbf16>
    %cst_30 = arith.constant dense<0.000000e+00> : vector<96x128xf32>
    %39 = tpu.matmul %37, %38, %cst_30 {dimension_numbers = #tpu.dot_dimension_numbers<[1], [0], [0], [1], [0, 0, 1, 1], [], []>} : vector<96x24xbf16>, vector<24x128xbf16>, vector<96x128xf32> -> vector<96x128xf32>
    %40 = vector.shape_cast %39 : vector<96x128xf32> to vector<6x16x128xf32>
    %c0_31 = arith.constant 0 : index
    %c0_32 = arith.constant 0 : index
    %c0_33 = arith.constant 0 : index
    %41 = vector.load %arg4[%c0_31, %c0_32, %c0_33] : memref<6x16x128xf32, #tpu.memory_space<vmem>>, vector<6x16x128xf32>
    tpu.vector_store %arg4[%c0_31, %c0_32, %c0_33], %40 {strides = array<i32>} : memref<6x16x128xf32, #tpu.memory_space<vmem>>, vector<6x16x128xf32>,
    return
  }
  func.func @transform_0(%arg0: i32) -> (i32, i32, i32) {
    %c0_i32 = arith.constant 0 : i32
    %c0_i32_0 = arith.constant 0 : i32
    %c0_i32_1 = arith.constant 0 : i32
    return %arg0, %c0_i32, %c0_i32_0 : i32, i32, i32
  }
  func.func @transform_1(%arg0: i32) -> (i32, i32) {
    %c0_i32 = arith.constant 0 : i32
    %c0_i32_0 = arith.constant 0 : i32
    %c0_i32_1 = arith.constant 0 : i32
    return %c0_i32, %c0_i32_0 : i32, i32
  }
  func.func @transform_2(%arg0: i32) -> (i32, i32) {
    %c0_i32 = arith.constant 0 : i32
    %c0_i32_0 = arith.constant 0 : i32
    %c0_i32_1 = arith.constant 0 : i32
    return %c0_i32, %c0_i32_0 : i32, i32
  }
  func.func @transform_3(%arg0: i32) -> (i32, i32, i32) {
    %c0_i32 = arith.constant 0 : i32
    %c0_i32_0 = arith.constant 0 : i32
    %c0_i32_1 = arith.constant 0 : i32
    return %arg0, %c0_i32, %c0_i32_0 : i32, i32, i32
  }
}

</mosaic_0001>

<bundles_post_ra>
// kernel: _short_side_scale_impl.1
= control target key start
LH: loop header
LB: loop body
LE: loop exit
PB: predicated region body
PF: predicated region fallthrough
CT: control target
= control target key end

     0   :  { %s818_s12 = smov 0   ;;  %s889_s0 = inlined_call_operand.vmem [shape: f32[12,16,24], index: 0, kind: input, shape index: {}]   ;;  %s890_s1 = inlined_call_operand.vmem [shape: bf16[16,16], index: 1, kind: input, shape index: {}]   ;;  %s891_s2 = inlined_call_operand.vmem [shape: bf16[24,128], index: 2, kind: input, shape index: {}]   ;;  %s892_s3 = inlined_call_operand.vmem [shape: f32[12,16,128], index: 3, kind: output, shape index: {}]  }
   0x1 LB: > { %s664_s13 = sadd.s32 4294967295, %s794_s12   ;;  %p668_p0 = scmp.ge.s32.totalorder %s794_s12, 1  ;;  %s794_s12 = sphi %s818_s12, %s13_s12  }
   0x2   : > { %p139_p1 = scmp.lt.s32.totalorder %s794_s12, 3 }
   0x4   : > { %p140_p2 = pnand %p668_p0, %p139_p1 }
   0x5   : > { %s165_s14 = smul.u32 (!%p140_p2), 6, %s664_s13  ;;  %v796_v0 = vmov (!%p140_p2), 0.0   ;;  %vm797_vm0 = vmmov (!%p140_p2), 0   ;;  %v785_v5 = vld [vmem:[%s890_s1] sm:$0xff] (!%p140_p2)   ;;  %vm190_vm1 = vcmask (!%p140_p2), 130048   ;;  %vm509_vm2 = vcmask (!%p140_p2), 1043456  }
   0x6   : > { %143 = sbr.rel (%p140_p2) target bundleno = 486 (0x1e6), region = 32  ;;  %722 = vmatprep.subr.bf16.mxu1 (!%p140_p2), %v796_v0  ;;  %724 = vmatprep.mubr.msk.bf16.mxu1 (!%p140_p2), %vm797_vm0, %v796_v0  ;;  %v786_v20 = vld [vmem:[%s891_s2] sm:$0xff] (!%p140_p2)   ;;  %v787_v21 = vld [vmem:[%s891_s2 + $0x8] ss:$0 sps:$4 sm:$0xff] (!%p140_p2)   ;;  %vm236_vm3 = vcmask (!%p140_p2), 195584  }
   0x7   : > { %p166_p3 = scmp.lt.s32.totalorder (!%p140_p2), %s165_s14, 11  ;;  %734 = vmatprep.subr.bf16.mxu0 (!%p140_p2), %v796_v0  ;;  %736 = vmatprep.mubr.msk.bf16.mxu0 (!%p140_p2), %vm797_vm0, %v796_v0  ;;  %v511_v22 = vsel (!%p140_p2), %vm509_vm2, %v787_v21, 0 }
   0xd   : > { %s894_s14 = smov (!%p166_p3, %s165_s14), 11 }
   0xe   : > { %s700_s15 = sshll.u32 %s894_s14, 4 }
   0xf   : > { %s836_s18 = scalar_lea.vmem %s889_s0, %s700_s15  ;;  %s177_s27 = scalar_lea.vmem %s892_s3, %s700_s15 }
  0x10   : > { %v182_v1 = vld [vmem:[%s836_s18] sm:$0xff]  ;;  %v183_v2 = vld [vmem:[%s836_s18 + $0x8] sm:$0xff]  ;;  %v675_v3 = vld [vmem:[%s836_s18 + $0x10] sm:$0xff] }
  0x11   : > { %v184_v4 = vpack.c.bf16 %v183_v2, %v182_v1  ;;  %v676_v6 = vld [vmem:[%s836_s18 + $0x18] sm:$0xff]  ;;  %v678_v7 = vld [vmem:[%s836_s18 + $0x20] sm:$0xff]  ;;  %v679_v8 = vld [vmem:[%s836_s18 + $0x28] sm:$0xff] }
  0x12   : > { %v684_v9 = vld [vmem:[%s836_s18 + $0x40] sm:$0xff]  ;;  %v241_v10 = vpack.c.bf16 %v676_v6, %v675_v3  ;;  %v288_v11 = vpack.c.bf16 %v679_v8, %v678_v7  ;;  %v685_v12 = vld [vmem:[%s836_s18 + $0x48] sm:$0xff]  ;;  %v681_v14 = vld [vmem:[%s836_s18 + $0x30] sm:$0xff] }
  0x13   : > { %723 = vmatpush3.bf16.msra.mxu1 %v184_v4  ;;  %v382_v13 = vpack.c.bf16 %v685_v12, %v684_v9  ;;  %v682_v15 = vld [vmem:[%s836_s18 + $0x38] sm:$0xff]  ;;  %v687_v17 = vld [vmem:[%s836_s18 + $0x50] sm:$0xff] }
  0x14   : > { %728 = vmatprep.subr.bf16.mxu1 %v796_v0  ;;  %735 = vmatpush3.bf16.msra.mxu0 %v288_v11  ;;  %v335_v16 = vpack.c.bf16 %v682_v15, %v681_v14  ;;  %v688_v18 = vld [vmem:[%s836_s18 + $0x58] sm:$0xff] }
  0x15   : > { %746 = vmatprep.subr.bf16.mxu0 %v796_v0  ;;  %v429_v19 = vpack.c.bf16 %v688_v18, %v687_v17 }
  0x16   : > { %725 = vmatmul.mubr.msk.bf16.vlgmr.msra.gmra.mrb[0].mxu1 %vm190_vm1, %v785_v5 }
  0x17   : > { %729 = vmatpush3.bf16.msra.mxu1 %v241_v10  ;;  %730 = vmatprep.mubr.msk.bf16.mxu1 %vm797_vm0, %v796_v0 }
  0x18   : > { %740 = vmatprep.subr.bf16.mxu1 %v796_v0  ;;  %737 = vmatmul.mubr.msk.bf16.vlgmr.msra.gmra.mrb[0].mxu0 %vm190_vm1, %v785_v5 }
  0x19   : > { %747 = vmatpush3.bf16.msra.mxu0 %v382_v13  ;;  %748 = vmatprep.mubr.msk.bf16.mxu0 %vm797_vm0, %v796_v0 }
  0x1a   : > { %758 = vmatprep.subr.bf16.mxu0 %v786_v20 }
  0x1e   : > { %731 = vmatmul.mubr.msk.bf16.vlgmr.msra.gmra.mrb[4].mxu1 %vm190_vm1, %v785_v5 }
  0x1f   : > { %741 = vmatpush3.bf16.msra.mxu1 %v335_v16  ;;  %742 = vmatprep.mubr.msk.bf16.mxu1 %vm797_vm0, %v796_v0 }
  0x20   : > { %752 = vmatprep.subr.bf16.mxu1 %v796_v0  ;;  %749 = vmatmul.mubr.msk.bf16.vlgmr.msra.gmra.mrb[4].mxu0 %vm190_vm1, %v785_v5 }
  0x21   : > { %759 = vmatpush3.bf16.msra.mxu0 %v786_v20 }
  0x22   : > { %774 = vmatprep.subr.msk.bf16.mxu0 %vm509_vm2, %v787_v21 }
  0x25   : > { %761 = vmatpush3.bf16.msra.mxu0 %v511_v22 }
  0x26   : > { %743 = vmatmul.mubr.msk.bf16.vlgmr.msra.gmra.mrb[8].mxu1 %vm190_vm1, %v785_v5 }
  0x27   : > { %753 = vmatpush3.bf16.msra.mxu1 %v429_v19  ;;  %754 = vmatprep.mubr.msk.bf16.mxu1 %vm797_vm0, %v796_v0 }
  0x2e   : > { %755 = vmatmul.mubr.msk.bf16.vlgmr.msra.gmra.mrb[12].mxu1 %vm190_vm1, %v785_v5 }
  0xe9   : > { %v228_v23 = vpop.f32.mrb[0].mxu1 }
  0xea   : > { %v726_v24 = vpop.f32.mrb[1].mxu1 }
  0xeb   : > { %v231_v25 = vpop.f32.mrb[2].mxu1  ;;  %v323_v26 = vpop.f32.mrb[0].mxu0 }
  0xec   : > { %v235_v27 = vpack.c.bf16 %v231_v25, %v228_v23  ;;  %v727_v28 = vpop.f32.mrb[3].mxu1  ;;  %v738_v29 = vpop.f32.mrb[1].mxu0 }
  0xed   : > { %v326_v30 = vpop.f32.mrb[2].mxu0 }
  0xee   : > { %237 = vst.msk [vmem:[#allocation2] sm:$0xff] %vm236_vm3, %v235_v27  ;;  %v330_v31 = vpack.c.bf16 %v326_v30, %v323_v26  ;;  %v739_v32 = vpop.f32.mrb[3].mxu0 }
  0xf0   : > { %331 = vst.msk [vmem:[#allocation2 + $0x10] sm:$0xff] %vm236_vm3, %v330_v31 }
  0xf1   : > { %v276_v33 = vpop.f32.mrb[4].mxu1 }
  0xf2   : > { %v732_v34 = vpop.f32.mrb[5].mxu1 }
  0xf3   : > { %v279_v35 = vpop.f32.mrb[6].mxu1  ;;  %v417_v36 = vpop.f32.mrb[4].mxu0 }
  0xf4   : > { %v283_v37 = vpack.c.bf16 %v279_v35, %v276_v33  ;;  %v733_v38 = vpop.f32.mrb[7].mxu1  ;;  %v750_v39 = vpop.f32.mrb[5].mxu0 }
  0xf5   : > { %v473_v40 = vld [vmem:[#allocation2] sm:$0xff]  ;;  %v420_v41 = vpop.f32.mrb[6].mxu0 }
  0xf6   : > { %284 = vst.msk [vmem:[#allocation2 + $0x8] sm:$0xff] %vm236_vm3, %v283_v37  ;;  %762 = vmatprep.mubr.msk.bf16.mxu0 %vm236_vm3, %v473_v40  ;;  %v424_v42 = vpack.c.bf16 %v420_v41, %v417_v36  ;;  %v751_v43 = vpop.f32.mrb[7].mxu0 }
  0xf7   : > { %v475_v49 = vld [vmem:[#allocation2 + $0x10] sm:$0xff] }
  0xf8   : > { %425 = vst.msk [vmem:[#allocation2 + $0x20] sm:$0xff] %vm236_vm3, %v424_v42 }
  0xf9   : > { %v370_v44 = vpop.f32.mrb[8].mxu1 }
  0xfa   : > { %v744_v45 = vpop.f32.mrb[9].mxu1 }
  0xfb   : > { %v373_v46 = vpop.f32.mrb[10].mxu1 }
  0xfc   : > { %v377_v47 = vpack.c.bf16 %v373_v46, %v370_v44  ;;  %v745_v48 = vpop.f32.mrb[11].mxu1 }
  0xfd   : > { %v474_v50 = vld [vmem:[#allocation2 + $0x8] sm:$0xff] }
  0xfe   : > { %378 = vst.msk [vmem:[#allocation2 + $0x18] sm:$0xff] %vm236_vm3, %v377_v47  ;;  %763 = vmatmul.mubr.msk.bf16.vlgmr.msra.gmra.mrb[8].mxu0 %vm236_vm3, %v474_v50 }
  0xff   : > { %766 = vmatprep.mubr.msk.bf16.mxu0 %vm236_vm3, %v475_v49  ;;  %v477_v56 = vld [vmem:[#allocation2 + $0x20] sm:$0xff] }
 0x101   : > { %v464_v51 = vpop.f32.mrb[12].mxu1 }
 0x102   : > { %v756_v52 = vpop.f32.mrb[13].mxu1 }
 0x103   : > { %v467_v53 = vpop.f32.mrb[14].mxu1 }
 0x104   : > { %v471_v54 = vpack.c.bf16 %v467_v53, %v464_v51  ;;  %v757_v55 = vpop.f32.mrb[15].mxu1 }
 0x105   : > { %v476_v57 = vld [vmem:[#allocation2 + $0x18] sm:$0xff] }
 0x106   : > { %472 = vst.msk [vmem:[#allocation2 + $0x28] sm:$0xff] %vm236_vm3, %v471_v54  ;;  %767 = vmatmul.mubr.msk.bf16.gmra.mrb[12].mxu0 %vm236_vm3, %v476_v57 }
 0x107   : > { %770 = vmatprep.mubr.msk.bf16.mxu0 %vm236_vm3, %v477_v56 }
 0x10d   : > { %v478_v58 = vld [vmem:[#allocation2 + $0x28] sm:$0xff] }
 0x10e   : > { %771 = vmatmul.mubr.msk.bf16.gmra.mrb[16].mxu0 %vm236_vm3, %v478_v58 }
 0x1d1   : > { %v764_v59 = vpop.f32.mrb[8].mxu0 }
 0x1d2   : > { %596 = vst [vmem:[%s177_s27 + $0x10] sm:$0xff] %v764_v59  ;;  %v547_v60 = vpop.f32.mrb[9].mxu0 }
 0x1d3   : > { %594 = vst [vmem:[%s177_s27] sm:$0xff] %v547_v60  ;;  %v765_v61 = vpop.f32.mrb[10].mxu0 }
 0x1d4   : > { %597 = vst [vmem:[%s177_s27 + $0x18] sm:$0xff] %v765_v61  ;;  %v550_v62 = vpop.f32.mrb[11].mxu0 }
 0x1d5   : > { %595 = vst [vmem:[%s177_s27 + $0x8] sm:$0xff] %v550_v62 }
 0x1d9   : > { %v768_v63 = vpop.f32.mrb[12].mxu0 }
 0x1da   : > { %600 = vst [vmem:[%s177_s27 + $0x30] sm:$0xff] %v768_v63  ;;  %v563_v0 = vpop.f32.mrb[13].mxu0 }
 0x1db   : > { %598 = vst [vmem:[%s177_s27 + $0x20] sm:$0xff] %v563_v0  ;;  %v769_v1 = vpop.f32.mrb[14].mxu0 }
 0x1dc   : > { %601 = vst [vmem:[%s177_s27 + $0x38] sm:$0xff] %v769_v1  ;;  %v566_v2 = vpop.f32.mrb[15].mxu0 }
 0x1dd   : > { %599 = vst [vmem:[%s177_s27 + $0x28] sm:$0xff] %v566_v2 }
 0x1e1   : > { %v772_v3 = vpop.f32.mrb[16].mxu0 }
 0x1e2   : > { %604 = vst [vmem:[%s177_s27 + $0x50] sm:$0xff] %v772_v3  ;;  %v579_v4 = vpop.f32.mrb[17].mxu0 }
 0x1e3   : > { %602 = vst [vmem:[%s177_s27 + $0x40] sm:$0xff] %v579_v4  ;;  %v773_v5 = vpop.f32.mrb[18].mxu0 }
 0x1e4   : > { %605 = vst [vmem:[%s177_s27 + $0x58] sm:$0xff] %v773_v5  ;;  %v582_v6 = vpop.f32.mrb[19].mxu0 }
 0x1e5   : > { %603 = vst [vmem:[%s177_s27 + $0x48] sm:$0xff] %v582_v6 }
 0x1e6 PF: > { %s13_s12 = sadd.s32 1, %s794_s12  }
 0x1e7   : > { %p10_p4 = scmp.ge.s32.totalorder %s13_s12, 4  }
 0x1e9   :  { %12 = sbr.rel (!%p10_p4) target bundleno = 1 (0x1), region = 67 }

</bundles_post_ra>
